<compile_context>
chip_gen: v5e
topology: v5e:2x2
jax: 0.10.0
libtpu: 0.0.40
codegen_flags: <defaults>
</compile_context>

<pallas_src>
from functools import partial

import jax
import jax.numpy as jnp
from jax import lax
from jax.experimental import pallas as pl
from jax.experimental.pallas import tpu as pltpu


# ---------------------------------------------------------------------------
# Tiling / config helpers
# ---------------------------------------------------------------------------
def _row_tiling(m):
    """Row tile for the projection GEMMs.

    Prefer big tiles (512 rows ~= 85% of the measured HBM roofline) but always
    keep >= 2 grid steps so the 'parallel' axis can shard across both
    TensorCores on v7x.  Falls back to a ragged cdiv grid (Pallas masks the
    writeback of the last tile) or a single full-extent block for tiny M.
    """
    for tm in (512, 256, 128, 64, 32, 16, 8):
        if m % tm == 0 and m // tm >= 2:
            return tm, m // tm
    if m > 512:
        return 512, pl.cdiv(m, 512)
    return m, 1


def _head_group(num_heads, head_dim):
    """Smallest group of heads whose combined width is a multiple of 128 lanes
    (unmasked vector stores); otherwise all heads (block == full C, always a
    legal block shape)."""
    for g in range(1, num_heads + 1):
        if num_heads % g == 0 and (g * head_dim) % 128 == 0:
            return g
    return num_heads


def _compiler_params(dim_sem, est_vmem_bytes):
    """dimension_semantics + scoped-VMEM limit only when the tiles need it."""
    kwargs = {"dimension_semantics": dim_sem}
    if est_vmem_bytes > 12 * 1024 * 1024:          # above v5e's 16 MiB default
        kwargs["vmem_limit_bytes"] = int(min(est_vmem_bytes * 1.5,
                                             48 * 1024 * 1024))
    return pltpu.CompilerParams(**kwargs)


def _should_fuse(batch, seq, dim):
    """Use the single fused kernel when everything comfortably fits in VMEM."""
    m = batch * seq
    est = (m * dim * 4                 # x (f32)
           + m * 3 * dim * 4           # qkv intermediate (f32)
           + m * dim * 4               # output (f32)
           + 3 * dim * dim * 2         # qkv weight (bf16)
           + dim * dim * 2 + dim * 4   # proj weight + bias
           + seq * seq * 4 * 2)        # per-head score intermediates
    return est <= (2 << 20) and seq <= 512


# ---------------------------------------------------------------------------
# Kernel 1: fused QKV projection  (M, C) @ (C, 3C) -> q, k, v each (M, C) bf16
# ---------------------------------------------------------------------------
def _qkv_proj_kernel(x_ref, w_ref, q_ref, k_ref, v_ref):
    c = q_ref.shape[-1]
    x = x_ref[...].astype(jnp.bfloat16)                       # MXU operand
    o = jnp.dot(x, w_ref[...], preferred_element_type=jnp.float32)  # (tm, 3C)
    q_ref[...] = o[:, :c].astype(q_ref.dtype)
    k_ref[...] = o[:, c:2 * c].astype(k_ref.dtype)
    v_ref[...] = o[:, 2 * c:].astype(v_ref.dtype)


def _qkv_proj(x_flat, w_qkv_b):
    m, c = x_flat.shape
    three_c = w_qkv_b.shape[1]
    tm, steps = _row_tiling(m)
    est = (2 * tm * c * 4               # x tile, double-buffered
           + c * three_c * 2            # resident weight
           + 3 * 2 * tm * c * 2)        # q/k/v out tiles, double-buffered
    out_sd = jax.ShapeDtypeStruct((m, c), jnp.bfloat16)
    out_blk = pl.BlockSpec((tm, c), lambda i: (i, 0))
    return pl.pallas_call(
        _qkv_proj_kernel,
        out_shape=(out_sd, out_sd, out_sd),
        grid=(steps,),
        in_specs=[
            pl.BlockSpec((tm, c), lambda i: (i, 0)),           # x rows
            pl.BlockSpec((c, three_c), lambda i: (0, 0)),      # weight (resident)
        ],
        out_specs=(out_blk, out_blk, out_blk),
        compiler_params=_compiler_params(("parallel",), est),
    )(x_flat, w_qkv_b)


# ---------------------------------------------------------------------------
# Kernel 2: attention over a group of G heads per grid step.
# q is pre-scaled (scale folded into the qkv weight).  Softmax stats in f32,
# normalisation applied after p@v (O(N*D) multiplies instead of O(N*N)).
# Output is written directly in the final (B, N, C) layout.
# ---------------------------------------------------------------------------
def _attn_kernel(q_ref, k_ref, v_ref, o_ref, *, head_dim, group):
    # Refs are (N, G*D); unrolled loop over the G heads with static slices.
    # TODO(synk): for N >= ~512 add q-row tiling / online softmax so the (N,N)
    # f32 score tile does not spill out of vregs.
    for g in range(group):
        sl = slice(g * head_dim, (g + 1) * head_dim)
        q = q_ref[:, sl]                                       # (N, D) bf16
        k = k_ref[:, sl]
        v = v_ref[:, sl]
        # q @ k^T without a transposed copy of k (contract last dims).
        s = lax.dot_general(q, k,
                            dimension_numbers=(((1,), (1,)), ((), ())),
                            preferred_element_type=jnp.float32)  # (N, N) f32
        s = s - jnp.max(s, axis=-1, keepdims=True)
        p = jnp.exp(s)
        l = jnp.sum(p, axis=-1, keepdims=True)
        o = jnp.dot(p.astype(jnp.bfloat16), v,
                    preferred_element_type=jnp.float32)          # (N, D) f32
        o_ref[:, sl] = (o * pl.reciprocal(l, approx=False)).astype(o_ref.dtype)


def _attention_heads(q, k, v, *, num_heads, head_dim):
    b, n, c = q.shape
    g = _head_group(num_heads, head_dim)
    gw = g * head_dim
    blk = pl.BlockSpec((None, n, gw), lambda bi, hg: (bi, 0, hg))
    est = (2 * 4 * n * gw * 2           # q, k, v, out tiles double-buffered
           + n * n * 4 * 3)             # score / exp intermediates
    kernel = partial(_attn_kernel, head_dim=head_dim, group=g)
    return pl.pallas_call(
        kernel,
        out_shape=jax.ShapeDtypeStruct((b, n, c), jnp.bfloat16),
        grid=(b, num_heads // g),
        in_specs=[blk, blk, blk],
        out_specs=blk,
        compiler_params=_compiler_params(("parallel", "parallel"), est),
    )(q, k, v)


# ---------------------------------------------------------------------------
# Kernel 3: output projection + bias  (M, C) @ (C, C) + b -> (M, C)
# ---------------------------------------------------------------------------
def _out_proj_kernel(y_ref, w_ref, b_ref, o_ref):
    acc = jnp.dot(y_ref[...], w_ref[...], preferred_element_type=jnp.float32)
    o_ref[...] = (acc + b_ref[...]).astype(o_ref.dtype)


def _out_proj(y_flat, w_proj_b, b_2d, out_dtype):
    m, c = y_flat.shape
    tm, steps = _row_tiling(m)
    est = 2 * tm * c * 2 + c * c * 2 + c * 4 + 2 * tm * c * 4
    return pl.pallas_call(
        _out_proj_kernel,
        out_shape=jax.ShapeDtypeStruct((m, c), out_dtype),
        grid=(steps,),
        in_specs=[
            pl.BlockSpec((tm, c), lambda i: (i, 0)),           # y rows (bf16)
            pl.BlockSpec((c, c), lambda i: (0, 0)),            # weight (resident)
            pl.BlockSpec((1, c), lambda i: (0, 0)),            # bias
        ],
        out_specs=pl.BlockSpec((tm, c), lambda i: (i, 0)),
        compiler_params=_compiler_params(("parallel",), est),
    )(y_flat, w_proj_b, b_2d)


# ---------------------------------------------------------------------------
# Fused single-call kernel for tiny problems (everything resident in VMEM).
# ---------------------------------------------------------------------------
def _fused_kernel(x_ref, w_qkv_ref, w_proj_ref, b_ref, o_ref,
                  *, batch, seq, heads, head_dim):
    dim = heads * head_dim
    x = x_ref[...].astype(jnp.bfloat16)                        # (M, C)
    qkv = jnp.dot(x, w_qkv_ref[...],
                  preferred_element_type=jnp.float32)          # (M, 3C) f32
    w_proj = w_proj_ref[...]                                   # (C, C) bf16
    bias = b_ref[...]                                          # (1, C) f32
    for b in range(batch):
        rows = slice(b * seq, (b + 1) * seq)
        acc = jnp.zeros((seq, dim), jnp.float32)
        for h in range(heads):
            cq = slice(h * head_dim, (h + 1) * head_dim)
            ck = slice(dim + h * head_dim, dim + (h + 1) * head_dim)
            cv = slice(2 * dim + h * head_dim, 2 * dim + (h + 1) * head_dim)
            q = qkv[rows, cq].astype(jnp.bfloat16)             # pre-scaled
            k = qkv[rows, ck].astype(jnp.bfloat16)
            v = qkv[rows, cv].astype(jnp.bfloat16)
            s = lax.dot_general(q, k,
                                dimension_numbers=(((1,), (1,)), ((), ())),
                                preferred_element_type=jnp.float32)
            s = s - jnp.max(s, axis=-1, keepdims=True)
            p = jnp.exp(s)
            l = jnp.sum(p, axis=-1, keepdims=True)
            o = jnp.dot(p.astype(jnp.bfloat16), v,
                        preferred_element_type=jnp.float32)    # (N, D)
            o = (o * pl.reciprocal(l, approx=False)).astype(jnp.bfloat16)
            # y @ w_proj decomposed over head column blocks: accumulate here.
            acc = acc + jnp.dot(o, w_proj[h * head_dim:(h + 1) * head_dim, :],
                                preferred_element_type=jnp.float32)
        o_ref[rows, :] = (acc + bias).astype(o_ref.dtype)


def _fused_attention(x_flat, w_qkv_b, w_proj_b, b_2d, *, batch, seq, heads,
                     head_dim, out_dtype):
    m, c = x_flat.shape
    kernel = partial(_fused_kernel, batch=batch, seq=seq, heads=heads,
                     head_dim=head_dim)
    return pl.pallas_call(
        kernel,
        out_shape=jax.ShapeDtypeStruct((m, c), out_dtype),
    )(x_flat, w_qkv_b, w_proj_b, b_2d)


# ---------------------------------------------------------------------------
# Wrapper: full Attention forward.
# ---------------------------------------------------------------------------
def attention_forward(x, w_qkv, w_proj, b_proj, *, num_heads, fuse=None):
    """x: (B, N, C) f32.  w_qkv: (C, 3C) (in x out), w_proj: (C, C), b_proj: (C,)."""
    B, N, C = x.shape
    assert C % num_heads == 0
    D = C // num_heads
    scale = D ** (-0.5)
    M = B * N

    # Fold softmax scale into the q columns of the qkv weight (free at runtime)
    # and cast weights to bf16 once (MXU operands; accumulation stays f32).
    w_qkv_scaled = jnp.concatenate([w_qkv[:, :C] * scale, w_qkv[:, C:]], axis=1)
    w_qkv_b = w_qkv_scaled.astype(jnp.bfloat16)
    w_proj_b = w_proj.astype(jnp.bfloat16)
    b_2d = b_proj.reshape(1, C).astype(jnp.float32)
    x_flat = x.reshape(M, C)

    if fuse is None:
        fuse = _should_fuse(B, N, C)
    if fuse:
        out = _fused_attention(x_flat, w_qkv_b, w_proj_b, b_2d, batch=B, seq=N,
                               heads=num_heads, head_dim=D, out_dtype=x.dtype)
        return out.reshape(B, N, C)

    # (1) QKV projection as one GEMM over all B*N rows -> q, k, v (M, C) bf16.
    q, k, v = _qkv_proj(x_flat, w_qkv_b)
    # (M, C) -> (B, N, C): free reshape, same linear layout (no relayout pass).
    q = q.reshape(B, N, C)
    k = k.reshape(B, N, C)
    v = v.reshape(B, N, C)

    # (2) Attention; BlockSpecs read per-(batch, head-group) tiles directly and
    # write the output already in the final (B, N, C) layout.
    y = _attention_heads(q, k, v, num_heads=num_heads, head_dim=D)

    # (3) Output projection + bias as one GEMM over all B*N rows.
    out = _out_proj(y.reshape(M, C), w_proj_b, b_2d, x.dtype)

    # attn_drop / proj_drop have ratio 0.0 -> identity.
    return out.reshape(B, N, C)


def attention_reference(x, w_qkv, w_proj, b_proj, *, num_heads):
    """Pure-JAX f32 reference matching the PyTorch forward exactly."""
    B, N, C = x.shape
    D = C // num_heads
    scale = D ** (-0.5)
    qkv = x @ w_qkv                                       # (B, N, 3C)
    qkv = qkv.reshape(B, N, 3, num_heads, D).transpose(2, 0, 3, 1, 4)
    q, k, v = qkv[0], qkv[1], qkv[2]                      # (B, H, N, D)
    attn = jnp.einsum('bhnd,bhmd->bhnm', q, k) * scale
    attn = jax.nn.softmax(attn, axis=-1)
    out = jnp.einsum('bhnm,bhmd->bhnd', attn, v)          # (B, H, N, D)
    out = out.transpose(0, 2, 1, 3).reshape(B, N, C)
    return out @ w_proj + b_proj


if __name__ == "__main__":
    # Small shapes consistent with the module: dim=32, 4 heads, head_dim=8.
    B, N, C = 2, 8, 32
    num_heads = 4

    key = jax.random.PRNGKey(0)
    kx, kqkv, kproj, kb = jax.random.split(key, 4)

    x = jax.random.normal(kx, (B, N, C), dtype=jnp.float32)

    # nn.Linear shapes: qkv (3C, C) no bias, proj (C, C) with bias.
    # Stored pre-transposed as (in, out).
    bound = 1.0 / (C ** 0.5)
    w_qkv = jax.random.uniform(kqkv, (C, 3 * C), dtype=jnp.float32,
                               minval=-bound, maxval=bound)
    w_proj = jax.random.uniform(kproj, (C, C), dtype=jnp.float32,
                                minval=-bound, maxval=bound)
    b_proj = jax.random.uniform(kb, (C,), dtype=jnp.float32,
                                minval=-bound, maxval=bound)

    ref = attention_reference(x, w_qkv, w_proj, b_proj, num_heads=num_heads)

    # Fused single-kernel path (auto-selected at this tiny size).
    out_fused = attention_forward(x, w_qkv, w_proj, b_proj, num_heads=num_heads)
    out_fused = jax.block_until_ready(out_fused)
    assert out_fused.shape == (B, N, C)
    # bf16 MXU operands -> ~1e-2 level absolute error.
    assert jnp.allclose(out_fused, ref, atol=3e-2, rtol=3e-2), \
        "fused path mismatch vs reference"

    # Multi-kernel pipeline (what realistic ViT shapes use) on the same inputs.
    out_pipe = attention_forward(x, w_qkv, w_proj, b_proj, num_heads=num_heads,
                                 fuse=False)
    out_pipe = jax.block_until_ready(out_pipe)
    assert out_pipe.shape == (B, N, C)
    assert jnp.allclose(out_pipe, ref, atol=3e-2, rtol=3e-2), \
        "pipeline path mismatch vs reference"

    print("KERNEL_OK")
</pallas_src>

<mosaic_0001>
module attributes {stable_mosaic.version = 11 : i64} {
  func.func @_fused_kernel(%arg0: memref<16x32xf32, #tpu.memory_space<vmem>>, %arg1: memref<32x96xbf16, #tpu.memory_space<vmem>>, %arg2: memref<32x32xbf16, #tpu.memory_space<vmem>>, %arg3: memref<1x32xf32, #tpu.memory_space<vmem>>, %arg4: memref<16x32xf32, #tpu.memory_space<vmem>>) attributes {dimension_semantics = [], scalar_prefetch = 0 : i64, scratch_operands = 0 : i64, tpu.core_type = #tpu.core_type<tc>} {
    %c0 = arith.constant 0 : index
    %c0_0 = arith.constant 0 : index
    %0 = vector.load %arg0[%c0, %c0_0] : memref<16x32xf32, #tpu.memory_space<vmem>>, vector<16x32xf32>
    %1 = arith.truncf %0 : vector<16x32xf32> to vector<16x32xbf16>
    %c0_1 = arith.constant 0 : index
    %c0_2 = arith.constant 0 : index
    %2 = vector.load %arg1[%c0_1, %c0_2] : memref<32x96xbf16, #tpu.memory_space<vmem>>, vector<32x96xbf16>
    %cst = arith.constant dense<0.000000e+00> : vector<16x96xf32>
    %3 = tpu.matmul %1, %2, %cst {dimension_numbers = #tpu.dot_dimension_numbers<[1], [0], [0], [1], [0, 0, 1, 1], [], []>} : vector<16x32xbf16>, vector<32x96xbf16>, vector<16x96xf32> -> vector<16x96xf32>
    %c0_3 = arith.constant 0 : index
    %c0_4 = arith.constant 0 : index
    %4 = vector.load %arg2[%c0_3, %c0_4] : memref<32x32xbf16, #tpu.memory_space<vmem>>, vector<32x32xbf16>
    %c0_5 = arith.constant 0 : index
    %c0_6 = arith.constant 0 : index
    %5 = vector.load %arg3[%c0_5, %c0_6] : memref<1x32xf32, #tpu.memory_space<vmem>>, vector<1x32xf32>
    %cst_7 = arith.constant 0.000000e+00 : f32
    %6 = vector.broadcast %cst_7 : f32 to vector<8x32xf32>
    %7 = vector.extract_strided_slice %3 {offsets = [0, 0], sizes = [8, 8], strides = [1, 1]} : vector<16x96xf32> to vector<8x8xf32>
    %8 = arith.truncf %7 : vector<8x8xf32> to vector<8x8xbf16>
    %9 = vector.extract_strided_slice %3 {offsets = [0, 32], sizes = [8, 8], strides = [1, 1]} : vector<16x96xf32> to vector<8x8xf32>
    %10 = arith.truncf %9 : vector<8x8xf32> to vector<8x8xbf16>
    %11 = vector.extract_strided_slice %3 {offsets = [0, 64], sizes = [8, 8], strides = [1, 1]} : vector<16x96xf32> to vector<8x8xf32>
    %12 = arith.truncf %11 : vector<8x8xf32> to vector<8x8xbf16>
    %cst_8 = arith.constant dense<0.000000e+00> : vector<8x8xf32>
    %13 = tpu.matmul %8, %10, %cst_8 {dimension_numbers = #tpu.dot_dimension_numbers<[1], [1], [0], [0], [0, 0, 1, 0], [], []>} : vector<8x8xbf16>, vector<8x8xbf16>, vector<8x8xf32> -> vector<8x8xf32>
    %cst_9 = arith.constant dense<0xFF800000> : vector<8xf32>
    %14 = vector.multi_reduction <maximumf>, %13, %cst_9 [1] : vector<8x8xf32> to vector<8xf32>
    %15 = vector.shape_cast %14 : vector<8xf32> to vector<8x1xf32>
    %16 = vector.broadcast %15 : vector<8x1xf32> to vector<8x8xf32>
    %17 = arith.subf %13, %16 : vector<8x8xf32>
    %18 = math.exp %17 : vector<8x8xf32>
    %cst_10 = arith.constant dense<0.000000e+00> : vector<8xf32>
    %19 = vector.multi_reduction <add>, %18, %cst_10 [1] : vector<8x8xf32> to vector<8xf32>
    %20 = vector.shape_cast %19 : vector<8xf32> to vector<8x1xf32>
    %21 = arith.truncf %18 : vector<8x8xf32> to vector<8x8xbf16>
    %cst_11 = arith.constant dense<0.000000e+00> : vector<8x8xf32>
    %22 = tpu.matmul %21, %12, %cst_11 {dimension_numbers = #tpu.dot_dimension_numbers<[1], [0], [0], [1], [0, 0, 1, 1], [], []>} : vector<8x8xbf16>, vector<8x8xbf16>, vector<8x8xf32> -> vector<8x8xf32>
    %23 = tpu.reciprocal %20 : vector<8x1xf32> -> vector<8x1xf32>
    %24 = vector.broadcast %23 : vector<8x1xf32> to vector<8x8xf32>
    %25 = arith.mulf %22, %24 : vector<8x8xf32>
    %26 = arith.truncf %25 : vector<8x8xf32> to vector<8x8xbf16>
    %27 = vector.extract_strided_slice %4 {offsets = [0, 0], sizes = [8, 32], strides = [1, 1]} : vector<32x32xbf16> to vector<8x32xbf16>
    %cst_12 = arith.constant dense<0.000000e+00> : vector<8x32xf32>
    %28 = tpu.matmul %26, %27, %cst_12 {dimension_numbers = #tpu.dot_dimension_numbers<[1], [0], [0], [1], [0, 0, 1, 1], [], []>} : vector<8x8xbf16>, vector<8x32xbf16>, vector<8x32xf32> -> vector<8x32xf32>
    %29 = arith.addf %6, %28 : vector<8x32xf32>
    %30 = vector.extract_strided_slice %3 {offsets = [0, 8], sizes = [8, 8], strides = [1, 1]} : vector<16x96xf32> to vector<8x8xf32>
    %31 = arith.truncf %30 : vector<8x8xf32> to vector<8x8xbf16>
    %32 = vector.extract_strided_slice %3 {offsets = [0, 40], sizes = [8, 8], strides = [1, 1]} : vector<16x96xf32> to vector<8x8xf32>
    %33 = arith.truncf %32 : vector<8x8xf32> to vector<8x8xbf16>
    %34 = vector.extract_strided_slice %3 {offsets = [0, 72], sizes = [8, 8], strides = [1, 1]} : vector<16x96xf32> to vector<8x8xf32>
    %35 = arith.truncf %34 : vector<8x8xf32> to vector<8x8xbf16>
    %cst_13 = arith.constant dense<0.000000e+00> : vector<8x8xf32>
    %36 = tpu.matmul %31, %33, %cst_13 {dimension_numbers = #tpu.dot_dimension_numbers<[1], [1], [0], [0], [0, 0, 1, 0], [], []>} : vector<8x8xbf16>, vector<8x8xbf16>, vector<8x8xf32> -> vector<8x8xf32>
    %cst_14 = arith.constant dense<0xFF800000> : vector<8xf32>
    %37 = vector.multi_reduction <maximumf>, %36, %cst_14 [1] : vector<8x8xf32> to vector<8xf32>
    %38 = vector.shape_cast %37 : vector<8xf32> to vector<8x1xf32>
    %39 = vector.broadcast %38 : vector<8x1xf32> to vector<8x8xf32>
    %40 = arith.subf %36, %39 : vector<8x8xf32>
    %41 = math.exp %40 : vector<8x8xf32>
    %cst_15 = arith.constant dense<0.000000e+00> : vector<8xf32>
    %42 = vector.multi_reduction <add>, %41, %cst_15 [1] : vector<8x8xf32> to vector<8xf32>
    %43 = vector.shape_cast %42 : vector<8xf32> to vector<8x1xf32>
    %44 = arith.truncf %41 : vector<8x8xf32> to vector<8x8xbf16>
    %cst_16 = arith.constant dense<0.000000e+00> : vector<8x8xf32>
    %45 = tpu.matmul %44, %35, %cst_16 {dimension_numbers = #tpu.dot_dimension_numbers<[1], [0], [0], [1], [0, 0, 1, 1], [], []>} : vector<8x8xbf16>, vector<8x8xbf16>, vector<8x8xf32> -> vector<8x8xf32>
    %46 = tpu.reciprocal %43 : vector<8x1xf32> -> vector<8x1xf32>
    %47 = vector.broadcast %46 : vector<8x1xf32> to vector<8x8xf32>
    %48 = arith.mulf %45, %47 : vector<8x8xf32>
    %49 = arith.truncf %48 : vector<8x8xf32> to vector<8x8xbf16>
    %50 = vector.extract_strided_slice %4 {offsets = [8, 0], sizes = [8, 32], strides = [1, 1]} : vector<32x32xbf16> to vector<8x32xbf16>
    %cst_17 = arith.constant dense<0.000000e+00> : vector<8x32xf32>
    %51 = tpu.matmul %49, %50, %cst_17 {dimension_numbers = #tpu.dot_dimension_numbers<[1], [0], [0], [1], [0, 0, 1, 1], [], []>} : vector<8x8xbf16>, vector<8x32xbf16>, vector<8x32xf32> -> vector<8x32xf32>
    %52 = arith.addf %29, %51 : vector<8x32xf32>
    %53 = vector.extract_strided_slice %3 {offsets = [0, 16], sizes = [8, 8], strides = [1, 1]} : vector<16x96xf32> to vector<8x8xf32>
    %54 = arith.truncf %53 : vector<8x8xf32> to vector<8x8xbf16>
    %55 = vector.extract_strided_slice %3 {offsets = [0, 48], sizes = [8, 8], strides = [1, 1]} : vector<16x96xf32> to vector<8x8xf32>
    %56 = arith.truncf %55 : vector<8x8xf32> to vector<8x8xbf16>
    %57 = vector.extract_strided_slice %3 {offsets = [0, 80], sizes = [8, 8], strides = [1, 1]} : vector<16x96xf32> to vector<8x8xf32>
    %58 = arith.truncf %57 : vector<8x8xf32> to vector<8x8xbf16>
    %cst_18 = arith.constant dense<0.000000e+00> : vector<8x8xf32>
    %59 = tpu.matmul %54, %56, %cst_18 {dimension_numbers = #tpu.dot_dimension_numbers<[1], [1], [0], [0], [0, 0, 1, 0], [], []>} : vector<8x8xbf16>, vector<8x8xbf16>, vector<8x8xf32> -> vector<8x8xf32>
    %cst_19 = arith.constant dense<0xFF800000> : vector<8xf32>
    %60 = vector.multi_reduction <maximumf>, %59, %cst_19 [1] : vector<8x8xf32> to vector<8xf32>
    %61 = vector.shape_cast %60 : vector<8xf32> to vector<8x1xf32>
    %62 = vector.broadcast %61 : vector<8x1xf32> to vector<8x8xf32>
    %63 = arith.subf %59, %62 : vector<8x8xf32>
    %64 = math.exp %63 : vector<8x8xf32>
    %cst_20 = arith.constant dense<0.000000e+00> : vector<8xf32>
    %65 = vector.multi_reduction <add>, %64, %cst_20 [1] : vector<8x8xf32> to vector<8xf32>
    %66 = vector.shape_cast %65 : vector<8xf32> to vector<8x1xf32>
    %67 = arith.truncf %64 : vector<8x8xf32> to vector<8x8xbf16>
    %cst_21 = arith.constant dense<0.000000e+00> : vector<8x8xf32>
    %68 = tpu.matmul %67, %58, %cst_21 {dimension_numbers = #tpu.dot_dimension_numbers<[1], [0], [0], [1], [0, 0, 1, 1], [], []>} : vector<8x8xbf16>, vector<8x8xbf16>, vector<8x8xf32> -> vector<8x8xf32>
    %69 = tpu.reciprocal %66 : vector<8x1xf32> -> vector<8x1xf32>
    %70 = vector.broadcast %69 : vector<8x1xf32> to vector<8x8xf32>
    %71 = arith.mulf %68, %70 : vector<8x8xf32>
    %72 = arith.truncf %71 : vector<8x8xf32> to vector<8x8xbf16>
    %73 = vector.extract_strided_slice %4 {offsets = [16, 0], sizes = [8, 32], strides = [1, 1]} : vector<32x32xbf16> to vector<8x32xbf16>
    %cst_22 = arith.constant dense<0.000000e+00> : vector<8x32xf32>
    %74 = tpu.matmul %72, %73, %cst_22 {dimension_numbers = #tpu.dot_dimension_numbers<[1], [0], [0], [1], [0, 0, 1, 1], [], []>} : vector<8x8xbf16>, vector<8x32xbf16>, vector<8x32xf32> -> vector<8x32xf32>
    %75 = arith.addf %52, %74 : vector<8x32xf32>
    %76 = vector.extract_strided_slice %3 {offsets = [0, 24], sizes = [8, 8], strides = [1, 1]} : vector<16x96xf32> to vector<8x8xf32>
    %77 = arith.truncf %76 : vector<8x8xf32> to vector<8x8xbf16>
    %78 = vector.extract_strided_slice %3 {offsets = [0, 56], sizes = [8, 8], strides = [1, 1]} : vector<16x96xf32> to vector<8x8xf32>
    %79 = arith.truncf %78 : vector<8x8xf32> to vector<8x8xbf16>
    %80 = vector.extract_strided_slice %3 {offsets = [0, 88], sizes = [8, 8], strides = [1, 1]} : vector<16x96xf32> to vector<8x8xf32>
    %81 = arith.truncf %80 : vector<8x8xf32> to vector<8x8xbf16>
    %cst_23 = arith.constant dense<0.000000e+00> : vector<8x8xf32>
    %82 = tpu.matmul %77, %79, %cst_23 {dimension_numbers = #tpu.dot_dimension_numbers<[1], [1], [0], [0], [0, 0, 1, 0], [], []>} : vector<8x8xbf16>, vector<8x8xbf16>, vector<8x8xf32> -> vector<8x8xf32>
    %cst_24 = arith.constant dense<0xFF800000> : vector<8xf32>
    %83 = vector.multi_reduction <maximumf>, %82, %cst_24 [1] : vector<8x8xf32> to vector<8xf32>
    %84 = vector.shape_cast %83 : vector<8xf32> to vector<8x1xf32>
    %85 = vector.broadcast %84 : vector<8x1xf32> to vector<8x8xf32>
    %86 = arith.subf %82, %85 : vector<8x8xf32>
    %87 = math.exp %86 : vector<8x8xf32>
    %cst_25 = arith.constant dense<0.000000e+00> : vector<8xf32>
    %88 = vector.multi_reduction <add>, %87, %cst_25 [1] : vector<8x8xf32> to vector<8xf32>
    %89 = vector.shape_cast %88 : vector<8xf32> to vector<8x1xf32>
    %90 = arith.truncf %87 : vector<8x8xf32> to vector<8x8xbf16>
    %cst_26 = arith.constant dense<0.000000e+00> : vector<8x8xf32>
    %91 = tpu.matmul %90, %81, %cst_26 {dimension_numbers = #tpu.dot_dimension_numbers<[1], [0], [0], [1], [0, 0, 1, 1], [], []>} : vector<8x8xbf16>, vector<8x8xbf16>, vector<8x8xf32> -> vector<8x8xf32>
    %92 = tpu.reciprocal %89 : vector<8x1xf32> -> vector<8x1xf32>
    %93 = vector.broadcast %92 : vector<8x1xf32> to vector<8x8xf32>
    %94 = arith.mulf %91, %93 : vector<8x8xf32>
    %95 = arith.truncf %94 : vector<8x8xf32> to vector<8x8xbf16>
    %96 = vector.extract_strided_slice %4 {offsets = [24, 0], sizes = [8, 32], strides = [1, 1]} : vector<32x32xbf16> to vector<8x32xbf16>
    %cst_27 = arith.constant dense<0.000000e+00> : vector<8x32xf32>
    %97 = tpu.matmul %95, %96, %cst_27 {dimension_numbers = #tpu.dot_dimension_numbers<[1], [0], [0], [1], [0, 0, 1, 1], [], []>} : vector<8x8xbf16>, vector<8x32xbf16>, vector<8x32xf32> -> vector<8x32xf32>
    %98 = arith.addf %75, %97 : vector<8x32xf32>
    %99 = vector.broadcast %5 : vector<1x32xf32> to vector<8x32xf32>
    %100 = arith.addf %98, %99 : vector<8x32xf32>
    %c0_28 = arith.constant 0 : index
    %c0_29 = arith.constant 0 : index
    %101 = vector.load %arg4[%c0_28, %c0_29] : memref<16x32xf32, #tpu.memory_space<vmem>>, vector<8x32xf32>
    tpu.vector_store %arg4[%c0_28, %c0_29], %100 {strides = array<i32>} : memref<16x32xf32, #tpu.memory_space<vmem>>, vector<8x32xf32>,
    %cst_30 = arith.constant 0.000000e+00 : f32
    %102 = vector.broadcast %cst_30 : f32 to vector<8x32xf32>
    %103 = vector.extract_strided_slice %3 {offsets = [8, 0], sizes = [8, 8], strides = [1, 1]} : vector<16x96xf32> to vector<8x8xf32>
    %104 = arith.truncf %103 : vector<8x8xf32> to vector<8x8xbf16>
    %105 = vector.extract_strided_slice %3 {offsets = [8, 32], sizes = [8, 8], strides = [1, 1]} : vector<16x96xf32> to vector<8x8xf32>
    %106 = arith.truncf %105 : vector<8x8xf32> to vector<8x8xbf16>
    %107 = vector.extract_strided_slice %3 {offsets = [8, 64], sizes = [8, 8], strides = [1, 1]} : vector<16x96xf32> to vector<8x8xf32>
    %108 = arith.truncf %107 : vector<8x8xf32> to vector<8x8xbf16>
    %cst_31 = arith.constant dense<0.000000e+00> : vector<8x8xf32>
    %109 = tpu.matmul %104, %106, %cst_31 {dimension_numbers = #tpu.dot_dimension_numbers<[1], [1], [0], [0], [0, 0, 1, 0], [], []>} : vector<8x8xbf16>, vector<8x8xbf16>, vector<8x8xf32> -> vector<8x8xf32>
    %cst_32 = arith.constant dense<0xFF800000> : vector<8xf32>
    %110 = vector.multi_reduction <maximumf>, %109, %cst_32 [1] : vector<8x8xf32> to vector<8xf32>
    %111 = vector.shape_cast %110 : vector<8xf32> to vector<8x1xf32>
    %112 = vector.broadcast %111 : vector<8x1xf32> to vector<8x8xf32>
    %113 = arith.subf %109, %112 : vector<8x8xf32>
    %114 = math.exp %113 : vector<8x8xf32>
    %cst_33 = arith.constant dense<0.000000e+00> : vector<8xf32>
    %115 = vector.multi_reduction <add>, %114, %cst_33 [1] : vector<8x8xf32> to vector<8xf32>
    %116 = vector.shape_cast %115 : vector<8xf32> to vector<8x1xf32>
    %117 = arith.truncf %114 : vector<8x8xf32> to vector<8x8xbf16>
    %cst_34 = arith.constant dense<0.000000e+00> : vector<8x8xf32>
    %118 = tpu.matmul %117, %108, %cst_34 {dimension_numbers = #tpu.dot_dimension_numbers<[1], [0], [0], [1], [0, 0, 1, 1], [], []>} : vector<8x8xbf16>, vector<8x8xbf16>, vector<8x8xf32> -> vector<8x8xf32>
    %119 = tpu.reciprocal %116 : vector<8x1xf32> -> vector<8x1xf32>
    %120 = vector.broadcast %119 : vector<8x1xf32> to vector<8x8xf32>
    %121 = arith.mulf %118, %120 : vector<8x8xf32>
    %122 = arith.truncf %121 : vector<8x8xf32> to vector<8x8xbf16>
    %123 = vector.extract_strided_slice %4 {offsets = [0, 0], sizes = [8, 32], strides = [1, 1]} : vector<32x32xbf16> to vector<8x32xbf16>
    %cst_35 = arith.constant dense<0.000000e+00> : vector<8x32xf32>
    %124 = tpu.matmul %122, %123, %cst_35 {dimension_numbers = #tpu.dot_dimension_numbers<[1], [0], [0], [1], [0, 0, 1, 1], [], []>} : vector<8x8xbf16>, vector<8x32xbf16>, vector<8x32xf32> -> vector<8x32xf32>
    %125 = arith.addf %102, %124 : vector<8x32xf32>
    %126 = vector.extract_strided_slice %3 {offsets = [8, 8], sizes = [8, 8], strides = [1, 1]} : vector<16x96xf32> to vector<8x8xf32>
    %127 = arith.truncf %126 : vector<8x8xf32> to vector<8x8xbf16>
    %128 = vector.extract_strided_slice %3 {offsets = [8, 40], sizes = [8, 8], strides = [1, 1]} : vector<16x96xf32> to vector<8x8xf32>
    %129 = arith.truncf %128 : vector<8x8xf32> to vector<8x8xbf16>
    %130 = vector.extract_strided_slice %3 {offsets = [8, 72], sizes = [8, 8], strides = [1, 1]} : vector<16x96xf32> to vector<8x8xf32>
    %131 = arith.truncf %130 : vector<8x8xf32> to vector<8x8xbf16>
    %cst_36 = arith.constant dense<0.000000e+00> : vector<8x8xf32>
    %132 = tpu.matmul %127, %129, %cst_36 {dimension_numbers = #tpu.dot_dimension_numbers<[1], [1], [0], [0], [0, 0, 1, 0], [], []>} : vector<8x8xbf16>, vector<8x8xbf16>, vector<8x8xf32> -> vector<8x8xf32>
    %cst_37 = arith.constant dense<0xFF800000> : vector<8xf32>
    %133 = vector.multi_reduction <maximumf>, %132, %cst_37 [1] : vector<8x8xf32> to vector<8xf32>
    %134 = vector.shape_cast %133 : vector<8xf32> to vector<8x1xf32>
    %135 = vector.broadcast %134 : vector<8x1xf32> to vector<8x8xf32>
    %136 = arith.subf %132, %135 : vector<8x8xf32>
    %137 = math.exp %136 : vector<8x8xf32>
    %cst_38 = arith.constant dense<0.000000e+00> : vector<8xf32>
    %138 = vector.multi_reduction <add>, %137, %cst_38 [1] : vector<8x8xf32> to vector<8xf32>
    %139 = vector.shape_cast %138 : vector<8xf32> to vector<8x1xf32>
    %140 = arith.truncf %137 : vector<8x8xf32> to vector<8x8xbf16>
    %cst_39 = arith.constant dense<0.000000e+00> : vector<8x8xf32>
    %141 = tpu.matmul %140, %131, %cst_39 {dimension_numbers = #tpu.dot_dimension_numbers<[1], [0], [0], [1], [0, 0, 1, 1], [], []>} : vector<8x8xbf16>, vector<8x8xbf16>, vector<8x8xf32> -> vector<8x8xf32>
    %142 = tpu.reciprocal %139 : vector<8x1xf32> -> vector<8x1xf32>
    %143 = vector.broadcast %142 : vector<8x1xf32> to vector<8x8xf32>
    %144 = arith.mulf %141, %143 : vector<8x8xf32>
    %145 = arith.truncf %144 : vector<8x8xf32> to vector<8x8xbf16>
    %146 = vector.extract_strided_slice %4 {offsets = [8, 0], sizes = [8, 32], strides = [1, 1]} : vector<32x32xbf16> to vector<8x32xbf16>
    %cst_40 = arith.constant dense<0.000000e+00> : vector<8x32xf32>
    %147 = tpu.matmul %145, %146, %cst_40 {dimension_numbers = #tpu.dot_dimension_numbers<[1], [0], [0], [1], [0, 0, 1, 1], [], []>} : vector<8x8xbf16>, vector<8x32xbf16>, vector<8x32xf32> -> vector<8x32xf32>
    %148 = arith.addf %125, %147 : vector<8x32xf32>
    %149 = vector.extract_strided_slice %3 {offsets = [8, 16], sizes = [8, 8], strides = [1, 1]} : vector<16x96xf32> to vector<8x8xf32>
    %150 = arith.truncf %149 : vector<8x8xf32> to vector<8x8xbf16>
    %151 = vector.extract_strided_slice %3 {offsets = [8, 48], sizes = [8, 8], strides = [1, 1]} : vector<16x96xf32> to vector<8x8xf32>
    %152 = arith.truncf %151 : vector<8x8xf32> to vector<8x8xbf16>
    %153 = vector.extract_strided_slice %3 {offsets = [8, 80], sizes = [8, 8], strides = [1, 1]} : vector<16x96xf32> to vector<8x8xf32>
    %154 = arith.truncf %153 : vector<8x8xf32> to vector<8x8xbf16>
    %cst_41 = arith.constant dense<0.000000e+00> : vector<8x8xf32>
    %155 = tpu.matmul %150, %152, %cst_41 {dimension_numbers = #tpu.dot_dimension_numbers<[1], [1], [0], [0], [0, 0, 1, 0], [], []>} : vector<8x8xbf16>, vector<8x8xbf16>, vector<8x8xf32> -> vector<8x8xf32>
    %cst_42 = arith.constant dense<0xFF800000> : vector<8xf32>
    %156 = vector.multi_reduction <maximumf>, %155, %cst_42 [1] : vector<8x8xf32> to vector<8xf32>
    %157 = vector.shape_cast %156 : vector<8xf32> to vector<8x1xf32>
    %158 = vector.broadcast %157 : vector<8x1xf32> to vector<8x8xf32>
    %159 = arith.subf %155, %158 : vector<8x8xf32>
    %160 = math.exp %159 : vector<8x8xf32>
    %cst_43 = arith.constant dense<0.000000e+00> : vector<8xf32>
    %161 = vector.multi_reduction <add>, %160, %cst_43 [1] : vector<8x8xf32> to vector<8xf32>
    %162 = vector.shape_cast %161 : vector<8xf32> to vector<8x1xf32>
    %163 = arith.truncf %160 : vector<8x8xf32> to vector<8x8xbf16>
    %cst_44 = arith.constant dense<0.000000e+00> : vector<8x8xf32>
    %164 = tpu.matmul %163, %154, %cst_44 {dimension_numbers = #tpu.dot_dimension_numbers<[1], [0], [0], [1], [0, 0, 1, 1], [], []>} : vector<8x8xbf16>, vector<8x8xbf16>, vector<8x8xf32> -> vector<8x8xf32>
    %165 = tpu.reciprocal %162 : vector<8x1xf32> -> vector<8x1xf32>
    %166 = vector.broadcast %165 : vector<8x1xf32> to vector<8x8xf32>
    %167 = arith.mulf %164, %166 : vector<8x8xf32>
    %168 = arith.truncf %167 : vector<8x8xf32> to vector<8x8xbf16>
    %169 = vector.extract_strided_slice %4 {offsets = [16, 0], sizes = [8, 32], strides = [1, 1]} : vector<32x32xbf16> to vector<8x32xbf16>
    %cst_45 = arith.constant dense<0.000000e+00> : vector<8x32xf32>
    %170 = tpu.matmul %168, %169, %cst_45 {dimension_numbers = #tpu.dot_dimension_numbers<[1], [0], [0], [1], [0, 0, 1, 1], [], []>} : vector<8x8xbf16>, vector<8x32xbf16>, vector<8x32xf32> -> vector<8x32xf32>
    %171 = arith.addf %148, %170 : vector<8x32xf32>
    %172 = vector.extract_strided_slice %3 {offsets = [8, 24], sizes = [8, 8], strides = [1, 1]} : vector<16x96xf32> to vector<8x8xf32>
    %173 = arith.truncf %172 : vector<8x8xf32> to vector<8x8xbf16>
    %174 = vector.extract_strided_slice %3 {offsets = [8, 56], sizes = [8, 8], strides = [1, 1]} : vector<16x96xf32> to vector<8x8xf32>
    %175 = arith.truncf %174 : vector<8x8xf32> to vector<8x8xbf16>
    %176 = vector.extract_strided_slice %3 {offsets = [8, 88], sizes = [8, 8], strides = [1, 1]} : vector<16x96xf32> to vector<8x8xf32>
    %177 = arith.truncf %176 : vector<8x8xf32> to vector<8x8xbf16>
    %cst_46 = arith.constant dense<0.000000e+00> : vector<8x8xf32>
    %178 = tpu.matmul %173, %175, %cst_46 {dimension_numbers = #tpu.dot_dimension_numbers<[1], [1], [0], [0], [0, 0, 1, 0], [], []>} : vector<8x8xbf16>, vector<8x8xbf16>, vector<8x8xf32> -> vector<8x8xf32>
    %cst_47 = arith.constant dense<0xFF800000> : vector<8xf32>
    %179 = vector.multi_reduction <maximumf>, %178, %cst_47 [1] : vector<8x8xf32> to vector<8xf32>
    %180 = vector.shape_cast %179 : vector<8xf32> to vector<8x1xf32>
    %181 = vector.broadcast %180 : vector<8x1xf32> to vector<8x8xf32>
    %182 = arith.subf %178, %181 : vector<8x8xf32>
    %183 = math.exp %182 : vector<8x8xf32>
    %cst_48 = arith.constant dense<0.000000e+00> : vector<8xf32>
    %184 = vector.multi_reduction <add>, %183, %cst_48 [1] : vector<8x8xf32> to vector<8xf32>
    %185 = vector.shape_cast %184 : vector<8xf32> to vector<8x1xf32>
    %186 = arith.truncf %183 : vector<8x8xf32> to vector<8x8xbf16>
    %cst_49 = arith.constant dense<0.000000e+00> : vector<8x8xf32>
    %187 = tpu.matmul %186, %177, %cst_49 {dimension_numbers = #tpu.dot_dimension_numbers<[1], [0], [0], [1], [0, 0, 1, 1], [], []>} : vector<8x8xbf16>, vector<8x8xbf16>, vector<8x8xf32> -> vector<8x8xf32>
    %188 = tpu.reciprocal %185 : vector<8x1xf32> -> vector<8x1xf32>
    %189 = vector.broadcast %188 : vector<8x1xf32> to vector<8x8xf32>
    %190 = arith.mulf %187, %189 : vector<8x8xf32>
    %191 = arith.truncf %190 : vector<8x8xf32> to vector<8x8xbf16>
    %192 = vector.extract_strided_slice %4 {offsets = [24, 0], sizes = [8, 32], strides = [1, 1]} : vector<32x32xbf16> to vector<8x32xbf16>
    %cst_50 = arith.constant dense<0.000000e+00> : vector<8x32xf32>
    %193 = tpu.matmul %191, %192, %cst_50 {dimension_numbers = #tpu.dot_dimension_numbers<[1], [0], [0], [1], [0, 0, 1, 1], [], []>} : vector<8x8xbf16>, vector<8x32xbf16>, vector<8x32xf32> -> vector<8x32xf32>
    %194 = arith.addf %171, %193 : vector<8x32xf32>
    %195 = vector.broadcast %5 : vector<1x32xf32> to vector<8x32xf32>
    %196 = arith.addf %194, %195 : vector<8x32xf32>
    %c8 = arith.constant 8 : index
    %c0_51 = arith.constant 0 : index
    %197 = vector.load %arg4[%c8, %c0_51] : memref<16x32xf32, #tpu.memory_space<vmem>>, vector<8x32xf32>
    tpu.vector_store %arg4[%c8, %c0_51], %196 {strides = array<i32>} : memref<16x32xf32, #tpu.memory_space<vmem>>, vector<8x32xf32>,
    return
  }
}

</mosaic_0001>

<bundles_post_ra>
// kernel: tpu_custom_call.1
= control target key start
LH: loop header
LB: loop body
LE: loop exit
PB: predicated region body
PF: predicated region fallthrough
CT: control target
= control target key end

     0   :  { %9 = vsyncpa [#allocation3], 0  ;;  %s1236_s0 = inlined_call_operand.hbm [shape: f32[16,32], index: 0, kind: input, shape index: {}]   ;;  %s1237_s1 = inlined_call_operand.hbm [shape: bf16[32,96], index: 1, kind: input, shape index: {}]   ;;  %s1238_s2 = inlined_call_operand.hbm [shape: bf16[32,32], index: 2, kind: input, shape index: {}]   ;;  %s1239_s3 = inlined_call_operand.vmem [shape: f32[1,32], index: 3, kind: input, shape index: {}]   ;;  %s1240_s4 = inlined_call_operand.hbm [shape: f32[16,32], index: 4, kind: output, shape index: {}]  }
   0x1   :  { %10 = vsyncpa [#allocation6], 0  ;;  %s29_s17 = sshll.u32 %s1237_s1, 4  ;;  %s30_s17 = int_to_ptr.hbm [resolvable:$true] %s29_s17 }
   0x2   :  { %11 = vsyncpa [#allocation4], 0  ;;  %s1029_s18 = smov [#allocation5]   ;;  %s16_s22 = sshll.u32 %s1236_s0, 4  ;;  %s17_s22 = int_to_ptr.hbm [resolvable:$true] %s16_s22 }
   0x3   :  { %s31_s19 = sshll.u32 %s1029_s18, 4  ;;  %s1030_s23 = smov 64   ;;  %s32_s19 = int_to_ptr.vmem [resolvable:$true] %s31_s19 }
   0x4   :  { %s1031_s24 = smov 4   ;;  %s1032_s25 = smov [#allocation2]  }
   0x5   :  { %37 = dma.hbm_to_vmem [thread:$0]  %s30_s17, 256, %s32_s19, [#allocation6], %s1030_s23, %s1030_s23, %s1031_s24  }
   0x6   :  { %s18_s26 = sshll.u32 %s1032_s25, 4  ;;  %s1033_s27 = smov 128   ;;  %s19_s26 = int_to_ptr.vmem [resolvable:$true] %s18_s26 }
   0x7   :  { %s1034_s1 = smov 8   ;;  %s42_s30 = sshll.u32 %s1238_s2, 4  ;;  %s43_s30 = int_to_ptr.hbm [resolvable:$true] %s42_s30 }
   0x8   :  { %24 = dma.hbm_to_vmem [thread:$0]  %s17_s22, 256, %s19_s26, [#allocation3], %s1033_s27, %s1033_s27, %s1034_s1  }
   0x9   :  { %s1035_s0 = smov [#allocation7]  }
   0xa   :  { %s44_s5 = sshll.u32 %s1035_s0, 4  ;;  %s45_s5 = int_to_ptr.vmem [resolvable:$true] %s44_s5 }
   0xb   :  { %50 = dma.hbm_to_vmem [thread:$0]  %s43_s30, 256, %s45_s5, [#allocation6], %s1030_s23, %s1030_s23, %s1031_s24  }
   0xc   :  { %1023 = dma.done.wait [#allocation3], 256  }
   0xd   :  { %1024 = vsyncadd [#allocation3], 4294967040 }
   0xe   :  { %1025 = dma.done.wait [#allocation6], 512  }
   0xf   :  { %1026 = vsyncadd [#allocation6], 4294966784  ;;  %v875_v0 = vld [vmem:[#allocation5 + $0x8] sm:$0xff]  ;;  %v874_v1 = vld [vmem:[#allocation5] sm:$0xff]  ;;  %vm85_vm0 = vcmask 261120   ;;  %s1036_s2 = smov 112  }
  0x10   :  { %95 = vmatpush.bf16.msra.mxu0 %v875_v0  ;;  %v66_v2 = vld [vmem:[#allocation2] sm:$0xff]  ;;  %v67_v3 = vld [vmem:[#allocation2 + $0x8] sm:$0xff]  ;;  %s1037_s6 = smov 120   ;;  %s1038_s7 = smov 96   ;;  %vm112_vm1 = vcmask 64512   ;;  %vm147_vm2 = vcmask 1043456  }
  0x11   :  { %v68_v4 = vpack.c.bf16 %v67_v3, %v66_v2  ;;  %s1039_s8 = smov 80   ;;  %s1040_s9 = smov 88   ;;  %v103_v50 = vld [vmem:[#allocation7] sm:$0xf]  ;;  %v104_v52 = vld [vmem:[#allocation7 + $0x4] sm:$0xf] }
  0x12   :  { %s1041_s10 = smov 56   ;;  %s1042_s11 = smov 48   ;;  %v1145_v51 = vsel %vm147_vm2, %v103_v50, 0  ;;  %v1149_v53 = vsel %vm147_vm2, %v104_v52, 0  ;;  %v105_v55 = vld [vmem:[#allocation7 + $0x8] sm:$0xf] }
  0x13   :  { %s1043_s12 = smov 104   ;;  %s1044_s13 = smov 72   ;;  %v1153_v56 = vsel %vm147_vm2, %v105_v55, 0 }
  0x14   :  { %96 = vmatpush.bf16.msra.mxu0 %v874_v1  ;;  %s1045_s14 = smov 40   ;;  %s827_s20 = sshll.u32 %s1240_s4, 4  ;;  %s828_s20 = int_to_ptr.hbm [resolvable:$true] %s827_s20 }
  0x17   :  { %849 = vmatmul.msk.bf16.vlgmr.msra.gmra.mxu0 %vm85_vm0, %v68_v4 }
  0x18   :  { %263 = vmatpush.bf16.msrb.mxu0 %v1149_v53 }
  0x1c   :  { %371 = vmatpush.bf16.msra.mxu0 %v1153_v56 }
  0x94   :  { %v98_v5 = vpop.f32.mrf.mxu0 }
  0x95   :  { %v1089_v6 = vpack.c.bf16 %v98_v5, %v98_v5 }
  0x97   :  { %288 = vrot.lane.b32.xlu2 %v1089_v6, %s1036_s2  ;;  %180 = vrot.lane.b32.xlu1 %v1089_v6, %s1037_s6 }
  0x98   :  { %110 = vrot.lane.b32.xlu0 %v1089_v6, %s1038_s7 }
  0x9c   :  { %v100_v25 = vpop.f32.mrf.mxu0 }
  0x9d   :  { %v1119_v28 = vpack.c.bf16 %v100_v25, %v100_v25 }
  0x9f   :  { %290 = vrot.lane.b32.xlu1 %v1089_v6, %s1039_s8 }
  0xa0   :  { %182 = vrot.lane.b32.xlu0 %v1089_v6, %s1040_s9 }
  0xa8   :  { %142 = vrot.lane.b32.xlu0 %v1089_v6, %s1030_s23 }
  0xb0   :  { %213 = vrot.lane.b32.xlu0 %v1089_v6, %s1041_s10 }
  0xf1   :  { %v289_v18 = vpop.permute.xlu2 %288 }
 0x109   :  { %v181_v7 = vpop.permute.xlu1 %180 }
 0x10a   :  { %v111_v8 = vpop.permute.xlu0 %110 }
 0x10b   :  { %v117_v9 = vsel %vm112_vm1, %v111_v8, 0 }
 0x10c   :  { %126 = vmatpush.bf16.xpose.msra.mxu1 %v117_v9 }
 0x111   :  { %v291_v10 = vpop.permute.xlu1 %290 }
 0x112   :  { %v183_v11 = vpop.permute.xlu0 %182  ;;  %v296_v12 = vsel %vm112_vm1, %v291_v10, 0 }
 0x113   :  { %850 = vmatmul.msk.bf16.vlgmr.msra.gmra.mxu1 %vm112_vm1, %v1089_v6  ;;  %v188_v13 = vsel %vm112_vm1, %v183_v11, 0 }
 0x114   :  { %197 = vmatpush.bf16.xpose.msra.mxu3 %v188_v13  ;;  %282 = vmatpush.bf16.msrb.mxu1 %v1145_v51 }
 0x11a   :  { %v143_v14 = vpop.permute.xlu0 %142 }
 0x11b   :  { %852 = vmatmul.msk.bf16.vlgmr.msra.gmra.mxu3 %vm112_vm1, %v181_v7  ;;  %v149_v15 = vsel %vm147_vm2, %v143_v14, 0 }
 0x11c   :  { %305 = vmatpush.bf16.xpose.msrb.mxu3 %v296_v12  ;;  %158 = vmatpush.bf16.msra.mxu2 %v149_v15 }
 0x122   :  { %v214_v16 = vpop.permute.xlu0 %213 }
 0x123   :  { %v219_v17 = vsel %vm147_vm2, %v214_v16, 0 }
 0x124   :  { %228 = vmatpush.bf16.msrb.mxu2 %v219_v17 }
 0x12b   :  { %856 = vmatmul.msk.bf16.vlgmr.msrb.gmra.mxu3 %vm112_vm1, %v289_v18 }
 0x190   :  { %v128_v19 = vpop.f32.mrf.mxu1 }
 0x191   :  { %v132_v20 = vsel %vm112_vm1, %v128_v19, -inf }
 0x192   :  { %133 = vmax.xlane.f32.xlu2 %v132_v20 }
 0x198   :  { %v130_v21 = vpop.f32.mrf.mxu1 }
 0x19e   :  { %v199_v22 = vpop.f32.mrf.mxu3 }
 0x19f   :  { %v203_v23 = vsel %vm112_vm1, %v199_v22, -inf }
 0x1a0   :  { %204 = vmax.xlane.f32.xlu1 %v203_v23 }
 0x1a6   :  { %v201_v24 = vpop.f32.mrf.mxu3 }
 0x1aa   :  { %321 = vrot.lane.b32.xlu2 %v1089_v6, %s1042_s11 }
 0x1ae   :  { %v307_v26 = vpop.f32.mrf.mxu3 }
 0x1af   :  { %v311_v27 = vsel %vm112_vm1, %v307_v26, -inf }
 0x1b0   :  { %312 = vmax.xlane.f32.xlu0 %v311_v27 }
 0x1b2   :  { %475 = vrot.lane.b32.xlu2 %v1119_v28, %s1038_s7 }
 0x1b6   :  { %v309_v29 = vpop.f32.mrf.mxu3 }
 0x1ba   :  { %378 = vrot.lane.b32.xlu2 %v1089_v6, %s1043_s12 }
 0x1c2   :  { %506 = vrot.lane.b32.xlu2 %v1119_v28, %s1030_s23 }
 0x205   :  { %v134_v30 = vpop.xlane.xlu2 %133 }
 0x206   :  { %v135_v31 = vsub.f32 %v128_v19, %v134_v30 }
 0x208   :  { %v136_v32 = vmul.f32 1.442695, %v135_v31 }
 0x20a   :  { %895 = vpow2.f32 %v136_v32 }
 0x20d   :  { %v322_v34 = vpop.permute.xlu2 %321 }
 0x20e   :  { %v327_v37 = vsel %vm147_vm2, %v322_v34, 0 }
 0x210   :  { %v896_v33 = vpop.eup %895 }
 0x211   :  { %v138_v35 = vsel %vm112_vm1, %v896_v33, 0.0  ;;  %v141_v36 = vpack.c.bf16 %v896_v33, %v896_v33 }
 0x212   :  { %139 = vadd.xlane.f32.xlu0 %v138_v35 }
 0x213   :  { %v205_v38 = vpop.xlane.xlu1 %204  ;;  %851 = vmatmul.msk.bf16.vlgmr.msra.gmra.mxu2 %vm112_vm1, %v141_v36 }
 0x214   :  { %v206_v39 = vsub.f32 %v199_v22, %v205_v38  ;;  %336 = vmatpush.bf16.msra.mxu2 %v327_v37 }
 0x215   :  { %v476_v19 = vpop.permute.xlu2 %475 }
 0x216   :  { %v207_v40 = vmul.f32 1.442695, %v206_v39  ;;  %v481_v25 = vsel %vm112_vm1, %v476_v19, 0 }
 0x218   :  { %897 = vpow2.f32 %v207_v40 }
 0x21d   :  { %v379_v31 = vpop.permute.xlu2 %378 }
 0x21e   :  { %v898_v41 = vpop.eup %897 }
 0x21f   :  { %v209_v42 = vsel %vm112_vm1, %v898_v41, 0.0  ;;  %v212_v43 = vpack.c.bf16 %v898_v41, %v898_v41 }
 0x220   :  { %210 = vadd.xlane.f32.xlu1 %v209_v42 }
 0x223   :  { %853 = vmatmul.msk.bf16.vlgmr.msrb.gmra.mxu2 %vm112_vm1, %v212_v43  ;;  %v313_v44 = vpop.xlane.xlu0 %312 }
 0x224   :  { %v314_v45 = vsub.f32 %v307_v26, %v313_v44 }
 0x225   :  { %v507_v41 = vpop.permute.xlu2 %506 }
 0x226   :  { %v315_v46 = vmul.f32 1.442695, %v314_v45  ;;  %v512_v44 = vsel %vm147_vm2, %v507_v41, 0 }
 0x228   :  { %899 = vpow2.f32 %v315_v46 }
 0x22e   :  { %v900_v47 = vpop.eup %899 }
 0x22f   :  { %v317_v48 = vsel %vm112_vm1, %v900_v47, 0.0  ;;  %v320_v49 = vpack.c.bf16 %v900_v47, %v900_v47 }
 0x230   :  { %318 = vadd.xlane.f32.xlu1 %v317_v48 }
 0x233   :  { %857 = vmatmul.msk.bf16.vlgmr.msra.gmra.mxu2 %vm112_vm1, %v320_v49 }
 0x249   :  { %380 = vrot.lane.b32.xlu1 %v1089_v6, %s1044_s13 }
 0x251   :  { %545 = vrot.lane.b32.xlu1 %v1119_v28, %s1040_s9 }
 0x259   :  { %543 = vrot.lane.b32.xlu1 %v1119_v28, %s1037_s6 }
 0x261   :  { %647 = vrot.lane.b32.xlu1 %v1119_v28, %s1039_s8 }
 0x269   :  { %645 = vrot.lane.b32.xlu1 %v1119_v28, %s1036_s2 }
 0x285   :  { %v140_v54 = vpop.xlane.xlu0 %139 }
 0x286   :  { %901 = vrcp.f32 %v140_v54  ;;  %v175_v60 = vand.u32 2147483648, %v140_v54  ;;  %v173_v62 = vand.u32 2147483647, %v140_v54  ;;  %vm169_vm4 = vweird.f32 %v140_v54 }
 0x288   :  { %v176_v1 = vor.u32 1.1754944e-38, %v175_v60  ;;  %vm174_vm6 = vcmp.eq.f32.partialorder %v173_v62, 8.507059e+37 }
 0x28c   :  { %v902_v57 = vpop.eup %901 }
 0x28d   :  { %v165_v58 = vmul.f32 %v902_v57, %v140_v54  ;;  %vm170_vm3 = vweird.f32 %v902_v57 }
 0x28e   :  { %vm171_vm5 = vmor %vm169_vm4, %vm170_vm3 }
 0x28f   :  { %v166_v59 = vsub.f32 1.0, %v165_v58 }
 0x291   :  { %v167_v61 = vmul.f32 %v902_v57, %v166_v59 }
 0x293   :  { %v211_v63 = vpop.xlane.xlu1 %210  ;;  %v168_v0 = vadd.f32 %v902_v57, %v167_v61 }
 0x294   :  { %903 = vrcp.f32 %v211_v63  ;;  %v245_v13 = vand.u32 2147483648, %v211_v63  ;;  %vm239_vm8 = vweird.f32 %v211_v63  ;;  %v243_v15 = vand.u32 2147483647, %v211_v63 }
 0x295   :  { %v172_v2 = vsel %vm171_vm5, %v902_v57, %v168_v0 }
 0x296   :  { %v160_v3 = vpop.f32.mrf.mxu2  ;;  %v177_v4 = vsel %vm174_vm6, %v176_v1, %v172_v2  ;;  %v246_v18 = vor.u32 1.1754944e-38, %v245_v13  ;;  %vm244_vm10 = vcmp.eq.f32.partialorder %v243_v15, 8.507059e+37 }
 0x297   :  { %v178_v5 = vmul.f32 %v177_v4, %v160_v3 }
 0x299   :  { %v179_v7 = vpack.c.bf16 %v178_v5, %v178_v5 }
 0x29a   :  { %v904_v8 = vpop.eup %903 }
 0x29b   :  { %v235_v9 = vmul.f32 %v904_v8, %v211_v63  ;;  %855 = vmatmul.msk.bf16.vlgmr.msrb.gmra.mxu1 %vm112_vm1, %v179_v7  ;;  %vm240_vm7 = vweird.f32 %v904_v8 }
 0x29c   :  { %vm241_vm9 = vmor %vm239_vm8, %vm240_vm7 }
 0x29d   :  { %v236_v10 = vsub.f32 1.0, %v235_v9 }
 0x29e   :  { %v162_v11 = vpop.f32.mrf.mxu2 }
 0x29f   :  { %v237_v12 = vmul.f32 %v904_v8, %v236_v10 }
 0x2a1   :  { %v238_v14 = vadd.f32 %v904_v8, %v237_v12 }
 0x2a3   :  { %v319_v16 = vpop.xlane.xlu1 %318  ;;  %v242_v17 = vsel %vm241_vm9, %v904_v8, %v238_v14 }
 0x2a4   :  { %905 = vrcp.f32 %v319_v16  ;;  %v247_v21 = vsel %vm244_vm10, %v246_v18, %v242_v17  ;;  %v353_v32 = vand.u32 2147483648, %v319_v16  ;;  %vm347_vm12 = vweird.f32 %v319_v16  ;;  %v106_v18 = vld [vmem:[#allocation7 + $0xc] sm:$0xf] }
 0x2a5   :  { %v351_v34 = vand.u32 2147483647, %v319_v16  ;;  %v1191_v19 = vsel %vm147_vm2, %v106_v18, 0 }
 0x2a6   :  { %v230_v20 = vpop.f32.mrf.mxu2  ;;  %v354_v36 = vor.u32 1.1754944e-38, %v353_v32  ;;  %461 = vmatpush.bf16.msrb.mxu2 %v1191_v19 }
 0x2a7   :  { %v248_v22 = vmul.f32 %v247_v21, %v230_v20  ;;  %vm352_vm14 = vcmp.eq.f32.partialorder %v351_v34, 8.507059e+37 }
 0x2a9   :  { %v249_v23 = vpack.c.bf16 %v248_v22, %v248_v22 }
 0x2aa   :  { %v906_v24 = vpop.eup %905 }
 0x2ab   :  { %v343_v26 = vmul.f32 %v906_v24, %v319_v16  ;;  %854 = vmatmul.msk.bf16.vlgmr.msrb.gmra.mxu0 %vm112_vm1, %v249_v23  ;;  %vm348_vm11 = vweird.f32 %v906_v24 }
 0x2ac   :  { %490 = vmatpush.bf16.xpose.msrb.mxu0 %v481_v25  ;;  %vm349_vm13 = vmor %vm347_vm12, %vm348_vm11 }
 0x2ad   :  { %v344_v27 = vsub.f32 1.0, %v343_v26 }
 0x2ae   :  { %v232_v29 = vpop.f32.mrf.mxu2 }
 0x2af   :  { %v345_v30 = vmul.f32 %v906_v24, %v344_v27 }
 0x2b1   :  { %v346_v33 = vadd.f32 %v906_v24, %v345_v30 }
 0x2b3   :  { %v350_v35 = vsel %vm349_vm13, %v906_v24, %v346_v33 }
 0x2b4   :  { %v355_v38 = vsel %vm352_vm14, %v354_v36, %v350_v35 }
 0x2b6   :  { %v338_v37 = vpop.f32.mrf.mxu2 }
 0x2b7   :  { %v356_v39 = vmul.f32 %v355_v38, %v338_v37 }
 0x2b9   :  { %v357_v40 = vpack.c.bf16 %v356_v39, %v356_v39 }
 0x2bb   :  { %858 = vmatmul.msk.bf16.vlgmr.msra.gmra.mxu0 %vm112_vm1, %v357_v40  ;;  %v381_v42 = vpop.permute.xlu1 %380 }
 0x2bc   :  { %v386_v43 = vsel %vm112_vm1, %v381_v42, 0  ;;  %623 = vmatpush.bf16.msra.mxu0 %v1149_v53 }
 0x2bd   :  { %395 = vmatpush.bf16.xpose.msra.mxu1 %v386_v43 }
 0x2be   :  { %v340_v45 = vpop.f32.mrf.mxu2 }
 0x2c3   :  { %v546_v0 = vpop.permute.xlu1 %545 }
 0x2c4   :  { %859 = vmatmul.msk.bf16.vlgmr.msra.gmra.mxu1 %vm112_vm1, %v379_v31  ;;  %v551_v11 = vsel %vm112_vm1, %v546_v0, 0 }
 0x2c5   :  { %521 = vmatpush.bf16.msrb.mxu1 %v512_v44 }
 0x2c9   :  { %639 = vmatpush.bf16.msra.mxu1 %v1145_v51 }
 0x2cb   :  { %862 = vmatmul.msk.bf16.vlgmr.msrb.gmra.mxu0 %vm112_vm1, %v1119_v28  ;;  %v544_v7 = vpop.permute.xlu1 %543 }
 0x2cc   :  { %725 = vmatpush.bf16.msrb.mxu0 %v1153_v56 }
 0x2d3   :  { %v648_v12 = vpop.permute.xlu1 %647 }
 0x2d4   :  { %v653_v14 = vsel %vm112_vm1, %v648_v12, 0 }
 0x2db   :  { %v646_v17 = vpop.permute.xlu1 %645 }
 0x318   :  { %v284_v46 = vpop.f32.mrf.mxu1 }
 0x320   :  { %v286_v47 = vpop.f32.mrf.mxu1 }
 0x328   :  { %v265_v48 = vpop.f32.mrf.mxu0 }
 0x329   :  { %v285_v49 = vadd.f32 %v284_v46, %v265_v48 }
 0x330   :  { %v267_v50 = vpop.f32.mrf.mxu0 }
 0x338   :  { %v373_v52 = vpop.f32.mrf.mxu0 }
 0x339   :  { %v1168_v53 = vadd.f32 %v373_v52, %v285_v49 }
 0x340   :  { %v375_v54 = vpop.f32.mrf.mxu0 }
 0x341   :  { %v397_v55 = vpop.f32.mrf.mxu1 }
 0x342   :  { %v401_v60 = vsel %vm112_vm1, %v397_v55, -inf }
 0x348   :  { %v492_v57 = vpop.f32.mrf.mxu0 }
 0x349   :  { %v399_v58 = vpop.f32.mrf.mxu1  ;;  %v496_v59 = vsel %vm112_vm1, %v492_v57, -inf }
 0x34a   :  { %497 = vmax.xlane.f32.xlu0 %v496_v59 }
 0x350   :  { %v494_v51 = vpop.f32.mrf.mxu0 }
 0x352   :  { %402 = vmax.xlane.f32.xlu0 %v401_v60 }
 0x366   :  { %411 = vrot.lane.b32.xlu0 %v1089_v6, %s1045_s14 }
 0x36e   :  { %734 = vrot.lane.b32.xlu0 %v1119_v28, %s1044_s13 }
 0x376   :  { %732 = vrot.lane.b32.xlu0 %v1119_v28, %s1043_s12 }
 0x3bd   :  { %v498_v56 = vpop.xlane.xlu0 %497 }
 0x3be   :  { %v499_v61 = vsub.f32 %v492_v57, %v498_v56 }
 0x3c0   :  { %v500_v62 = vmul.f32 1.442695, %v499_v61 }
 0x3c2   :  { %907 = vpow2.f32 %v500_v62 }
 0x3c5   :  { %v403_v63 = vpop.xlane.xlu0 %402 }
 0x3c6   :  { %v404_v1 = vsub.f32 %v397_v55, %v403_v63 }
 0x3c8   :  { %v908_v2 = vpop.eup %907  ;;  %v405_v3 = vmul.f32 1.442695, %v404_v1 }
 0x3c9   :  { %v505_v4 = vpack.c.bf16 %v908_v2, %v908_v2  ;;  %v502_v5 = vsel %vm112_vm1, %v908_v2, 0.0 }
 0x3ca   :  { %909 = vpow2.f32 %v405_v3  ;;  %503 = vadd.xlane.f32.xlu2 %v502_v5  ;;  %v1210_v3 = vld [vmem:[%s1239_s3] ss:$0 sm:$0xff]  ;;  %s1046_s3 = smov [#allocation8]  }
 0x3cb   :  { %863 = vmatmul.msk.bf16.vlgmr.msrb.gmra.mxu1 %vm112_vm1, %v505_v4  ;;  %s825_s17 = sshll.u32 %s1046_s3, 4  ;;  %s826_s17 = int_to_ptr.vmem [resolvable:$true] %s825_s17 }
 0x3d0   :  { %v910_v6 = vpop.eup %909 }
 0x3d1   :  { %v407_v8 = vsel %vm112_vm1, %v910_v6, 0.0  ;;  %v410_v13 = vpack.c.bf16 %v910_v6, %v910_v6 }
 0x3d2   :  { %408 = vadd.xlane.f32.xlu1 %v407_v8 }
 0x3d8   :  { %v412_v9 = vpop.permute.xlu0 %411 }
 0x3d9   :  { %v417_v10 = vsel %vm147_vm2, %v412_v9, 0 }
 0x3da   :  { %426 = vmatpush.bf16.msra.mxu3 %v417_v10 }
 0x3dd   :  { %860 = vmatmul.msk.bf16.vlgmr.msra.gmra.mxu3 %vm112_vm1, %v410_v13 }
 0x3de   :  { %560 = vmatpush.bf16.xpose.msrb.mxu3 %v551_v11 }
 0x3e0   :  { %v735_v15 = vpop.permute.xlu0 %734 }
 0x3e1   :  { %v740_v16 = vsel %vm112_vm1, %v735_v15, 0 }
 0x3e2   :  { %576 = vrot.lane.b32.xlu2 %v1119_v28, %s1041_s10  ;;  %749 = vmatpush.bf16.xpose.msrb.mxu1 %v740_v16 }
 0x3e6   :  { %662 = vmatpush.bf16.xpose.msra.mxu3 %v653_v14 }
 0x3e8   :  { %v733_v52 = vpop.permute.xlu0 %732 }
 0x3ed   :  { %864 = vmatmul.msk.bf16.vlgmr.msrb.gmra.mxu3 %vm112_vm1, %v544_v7 }
 0x3fd   :  { %868 = vmatmul.msk.bf16.vlgmr.msra.gmra.mxu3 %vm112_vm1, %v646_v17 }
 0x43d   :  { %v504_v20 = vpop.xlane.xlu2 %503 }
 0x43e   :  { %911 = vrcp.f32 %v504_v20  ;;  %v538_v29 = vand.u32 2147483648, %v504_v20  ;;  %v536_v31 = vand.u32 2147483647, %v504_v20  ;;  %vm532_vm3 = vweird.f32 %v504_v20 }
 0x440   :  { %v539_v34 = vor.u32 1.1754944e-38, %v538_v29  ;;  %vm537_vm5 = vcmp.eq.f32.partialorder %v536_v31, 8.507059e+37 }
 0x444   :  { %v912_v21 = vpop.eup %911 }
 0x445   :  { %v528_v22 = vmul.f32 %v912_v21, %v504_v20  ;;  %v577_v23 = vpop.permute.xlu2 %576  ;;  %v409_v24 = vpop.xlane.xlu1 %408  ;;  %vm533_vm15 = vweird.f32 %v912_v21 }
 0x446   :  { %v582_v25 = vsel %vm147_vm2, %v577_v23, 0  ;;  %913 = vrcp.f32 %v409_v24  ;;  %vm534_vm4 = vmor %vm532_vm3, %vm533_vm15  ;;  %v443_v44 = vand.u32 2147483648, %v409_v24  ;;  %vm437_vm7 = vweird.f32 %v409_v24 }
 0x447   :  { %v529_v26 = vsub.f32 1.0, %v528_v22  ;;  %591 = vmatpush.bf16.msra.mxu2 %v582_v25  ;;  %v441_v45 = vand.u32 2147483647, %v409_v24 }
 0x448   :  { %v523_v27 = vpop.f32.mrf.mxu1  ;;  %v444_v47 = vor.u32 1.1754944e-38, %v443_v44 }
 0x449   :  { %v530_v30 = vmul.f32 %v912_v21, %v529_v26  ;;  %vm442_vm9 = vcmp.eq.f32.partialorder %v441_v45, 8.507059e+37 }
 0x44b   :  { %v531_v32 = vadd.f32 %v912_v21, %v530_v30 }
 0x44c   :  { %v914_v33 = vpop.eup %913 }
 0x44d   :  { %v433_v35 = vmul.f32 %v914_v33, %v409_v24  ;;  %v535_v36 = vsel %vm534_vm4, %v912_v21, %v531_v32  ;;  %vm438_vm6 = vweird.f32 %v914_v33 }
 0x44e   :  { %v540_v37 = vsel %vm537_vm5, %v539_v34, %v535_v36  ;;  %vm439_vm8 = vmor %vm437_vm7, %vm438_vm6 }
 0x44f   :  { %v541_v38 = vmul.f32 %v540_v37, %v523_v27  ;;  %v434_v40 = vsub.f32 1.0, %v433_v35 }
 0x450   :  { %v525_v39 = vpop.f32.mrf.mxu1 }
 0x451   :  { %v542_v41 = vpack.c.bf16 %v541_v38, %v541_v38  ;;  %v435_v42 = vmul.f32 %v914_v33, %v434_v40 }
 0x453   :  { %867 = vmatmul.msk.bf16.vlgmr.msra.gmra.mxu1 %vm112_vm1, %v542_v41  ;;  %v436_v43 = vadd.f32 %v914_v33, %v435_v42 }
 0x455   :  { %v440_v46 = vsel %vm439_vm8, %v914_v33, %v436_v43 }
 0x456   :  { %v445_v49 = vsel %vm442_vm9, %v444_v47, %v440_v46 }
 0x460   :  { %v428_v48 = vpop.f32.mrf.mxu3 }
 0x461   :  { %v446_v50 = vmul.f32 %v445_v49, %v428_v48 }
 0x463   :  { %v447_v54 = vpack.c.bf16 %v446_v50, %v446_v50  ;;  %871 = vmatmul.msk.bf16.vlgmr.msrb.gmra.mxu1 %vm112_vm1, %v733_v52 }
 0x465   :  { %861 = vmatmul.msk.bf16.vlgmr.msrb.gmra.mxu2 %vm112_vm1, %v447_v54 }
 0x468   :  { %v430_v55 = vpop.f32.mrf.mxu3 }
 0x470   :  { %v562_v57 = vpop.f32.mrf.mxu3 }
 0x471   :  { %v566_v58 = vsel %vm112_vm1, %v562_v57, -inf }
 0x472   :  { %567 = vmax.xlane.f32.xlu0 %v566_v58 }
 0x478   :  { %v564_v59 = vpop.f32.mrf.mxu3 }
 0x480   :  { %v664_v51 = vpop.f32.mrf.mxu3 }
 0x481   :  { %v668_v60 = vsel %vm112_vm1, %v664_v51, -inf }
 0x482   :  { %669 = vmax.xlane.f32.xlu1 %v668_v60 }
 0x486   :  { %765 = vrot.lane.b32.xlu0 %v1119_v28, %s1045_s14 }
 0x488   :  { %v666_v56 = vpop.f32.mrf.mxu3 }
 0x49b   :  { %678 = vrot.lane.b32.xlu1 %v1119_v28, %s1042_s11 }
 0x4d0   :  { %v1204_v61 = vpop.f32.mrf.mxu1 }
 0x4d8   :  { %v643_v62 = vpop.f32.mrf.mxu1 }
 0x4e0   :  { %v751_v63 = vpop.f32.mrf.mxu1 }
 0x4e1   :  { %v755_v0 = vsel %vm112_vm1, %v751_v63, -inf }
 0x4e2   :  { %756 = vmax.xlane.f32.xlu2 %v755_v0 }
 0x4e5   :  { %v568_v1 = vpop.xlane.xlu0 %567 }
 0x4e6   :  { %v569_v2 = vsub.f32 %v562_v57, %v568_v1 }
 0x4e8   :  { %v570_v4 = vmul.f32 1.442695, %v569_v2  ;;  %v463_v5 = vpop.f32.mrf.mxu2  ;;  %v753_v6 = vpop.f32.mrf.mxu1 }
 0x4e9   :  { %v467_v7 = vadd.f32 %v463_v5, %v1168_v53 }
 0x4ea   :  { %915 = vpow2.f32 %v570_v4 }
 0x4eb   :  { %v471_v28 = vadd.f32 %v1210_v3, %v467_v7 }
 0x4ed   :  { %472 = vst.msk [vmem:[#allocation8] sm:$0xff] %vm85_vm0, %v471_v28 }
 0x4f0   :  { %v916_v8 = vpop.eup %915  ;;  %v465_v9 = vpop.f32.mrf.mxu2 }
 0x4f1   :  { %v575_v10 = vpack.c.bf16 %v916_v8, %v916_v8  ;;  %v572_v11 = vsel %vm112_vm1, %v916_v8, 0.0 }
 0x4f2   :  { %573 = vadd.xlane.f32.xlu0 %v572_v11 }
 0x4f3   :  { %865 = vmatmul.msk.bf16.vlgmr.msra.gmra.mxu2 %vm112_vm1, %v575_v10 }
 0x4f5   :  { %v670_v12 = vpop.xlane.xlu1 %669 }
 0x4f6   :  { %v671_v13 = vsub.f32 %v664_v51, %v670_v12 }
 0x4f8   :  { %v672_v14 = vmul.f32 1.442695, %v671_v13  ;;  %v766_v15 = vpop.permute.xlu0 %765 }
 0x4f9   :  { %v771_v16 = vsel %vm147_vm2, %v766_v15, 0 }
 0x4fa   :  { %917 = vpow2.f32 %v672_v14  ;;  %780 = vmatpush.bf16.msrb.mxu3 %v771_v16 }
 0x500   :  { %v918_v53 = vpop.eup %917 }
 0x501   :  { %v674_v17 = vsel %vm112_vm1, %v918_v53, 0.0  ;;  %v677_v21 = vpack.c.bf16 %v918_v53, %v918_v53 }
 0x502   :  { %675 = vadd.xlane.f32.xlu1 %v674_v17 }
 0x50d   :  { %v679_v18 = vpop.permute.xlu1 %678 }
 0x50e   :  { %v684_v20 = vsel %vm147_vm2, %v679_v18, 0 }
 0x50f   :  { %693 = vmatpush.bf16.msrb.mxu2 %v684_v20 }
 0x512   :  { %869 = vmatmul.msk.bf16.vlgmr.msrb.gmra.mxu2 %vm112_vm1, %v677_v21 }
 0x513   :  { %812 = vmatpush.bf16.msra.mxu2 %v1191_v19 }
 0x555   :  { %v757_v22 = vpop.xlane.xlu2 %756 }
 0x556   :  { %v758_v23 = vsub.f32 %v751_v63, %v757_v22 }
 0x558   :  { %v759_v24 = vmul.f32 1.442695, %v758_v23 }
 0x55a   :  { %919 = vpow2.f32 %v759_v24 }
 0x560   :  { %v920_v25 = vpop.eup %919 }
 0x561   :  { %v764_v26 = vpack.c.bf16 %v920_v25, %v920_v25  ;;  %v761_v27 = vsel %vm112_vm1, %v920_v25, 0.0 }
 0x562   :  { %762 = vadd.xlane.f32.xlu2 %v761_v27 }
 0x563   :  { %872 = vmatmul.msk.bf16.vlgmr.msrb.gmra.mxu3 %vm112_vm1, %v764_v26 }
 0x565   :  { %v574_v29 = vpop.xlane.xlu0 %573 }
 0x566   :  { %921 = vrcp.f32 %v574_v29  ;;  %v608_v33 = vand.u32 2147483648, %v574_v29  ;;  %v606_v34 = vand.u32 2147483647, %v574_v29  ;;  %vm602_vm10 = vweird.f32 %v574_v29 }
 0x568   :  { %v609_v36 = vor.u32 1.1754944e-38, %v608_v33  ;;  %vm607_vm12 = vcmp.eq.f32.partialorder %v606_v34, 8.507059e+37 }
 0x56c   :  { %v922_v30 = vpop.eup %921 }
 0x56d   :  { %v598_v31 = vmul.f32 %v922_v30, %v574_v29  ;;  %vm603_vm2 = vweird.f32 %v922_v30 }
 0x56e   :  { %vm604_vm11 = vmor %vm602_vm10, %vm603_vm2 }
 0x56f   :  { %v599_v32 = vsub.f32 1.0, %v598_v31 }
 0x571   :  { %v600_v19 = vmul.f32 %v922_v30, %v599_v32 }
 0x573   :  { %v601_v35 = vadd.f32 %v922_v30, %v600_v19 }
 0x575   :  { %v605_v37 = vsel %vm604_vm11, %v922_v30, %v601_v35  ;;  %v676_v38 = vpop.xlane.xlu1 %675 }
 0x576   :  { %v593_v39 = vpop.f32.mrf.mxu2  ;;  %v610_v40 = vsel %vm607_vm12, %v609_v36, %v605_v37  ;;  %923 = vrcp.f32 %v676_v38  ;;  %v710_v49 = vand.u32 2147483648, %v676_v38  ;;  %vm704_vm14 = vweird.f32 %v676_v38 }
 0x577   :  { %v611_v41 = vmul.f32 %v610_v40, %v593_v39  ;;  %v708_v50 = vand.u32 2147483647, %v676_v38 }
 0x578   :  { %v711_v54 = vor.u32 1.1754944e-38, %v710_v49 }
 0x579   :  { %v612_v42 = vpack.c.bf16 %v611_v41, %v611_v41  ;;  %vm709_vm3 = vcmp.eq.f32.partialorder %v708_v50, 8.507059e+37 }
 0x57b   :  { %866 = vmatmul.msk.bf16.vlgmr.msra.gmra.mxu0 %vm112_vm1, %v612_v42 }
 0x57c   :  { %v924_v44 = vpop.eup %923 }
 0x57d   :  { %v700_v45 = vmul.f32 %v924_v44, %v676_v38  ;;  %vm705_vm13 = vweird.f32 %v924_v44 }
 0x57e   :  { %v595_v43 = vpop.f32.mrf.mxu2  ;;  %vm706_vm15 = vmor %vm704_vm14, %vm705_vm13 }
 0x57f   :  { %v701_v46 = vsub.f32 1.0, %v700_v45 }
 0x581   :  { %v702_v47 = vmul.f32 %v924_v44, %v701_v46 }
 0x583   :  { %v703_v48 = vadd.f32 %v924_v44, %v702_v47 }
 0x585   :  { %v707_v52 = vsel %vm706_vm15, %v924_v44, %v703_v48 }
 0x586   :  { %v712_v57 = vsel %vm709_vm3, %v711_v54, %v707_v52 }
 0x595   :  { %v695_v55 = vpop.f32.mrf.mxu2 }
 0x596   :  { %v713_v58 = vmul.f32 %v712_v57, %v695_v55 }
 0x598   :  { %v714_v59 = vpack.c.bf16 %v713_v58, %v713_v58 }
 0x59a   :  { %870 = vmatmul.msk.bf16.vlgmr.msrb.gmra.mxu0 %vm112_vm1, %v714_v59 }
 0x59d   :  { %v697_v51 = vpop.f32.mrf.mxu2 }
 0x5d5   :  { %v763_v60 = vpop.xlane.xlu2 %762 }
 0x5d6   :  { %925 = vrcp.f32 %v763_v60  ;;  %v797_v0 = vand.u32 2147483648, %v763_v60  ;;  %v795_v2 = vand.u32 2147483647, %v763_v60  ;;  %vm791_vm5 = vweird.f32 %v763_v60 }
 0x5d8   :  { %v798_v5 = vor.u32 1.1754944e-38, %v797_v0  ;;  %vm796_vm7 = vcmp.eq.f32.partialorder %v795_v2, 8.507059e+37 }
 0x5dc   :  { %v926_v56 = vpop.eup %925 }
 0x5dd   :  { %v787_v62 = vmul.f32 %v926_v56, %v763_v60  ;;  %vm792_vm4 = vweird.f32 %v926_v56 }
 0x5de   :  { %vm793_vm6 = vmor %vm791_vm5, %vm792_vm4 }
 0x5df   :  { %v788_v63 = vsub.f32 1.0, %v787_v62 }
 0x5e1   :  { %v789_v1 = vmul.f32 %v926_v56, %v788_v63 }
 0x5e3   :  { %v790_v4 = vadd.f32 %v926_v56, %v789_v1 }
 0x5e5   :  { %v794_v6 = vsel %vm793_vm6, %v926_v56, %v790_v4 }
 0x5e6   :  { %v782_v7 = vpop.f32.mrf.mxu3  ;;  %v799_v28 = vsel %vm796_vm7, %v798_v5, %v794_v6 }
 0x5e7   :  { %v800_v8 = vmul.f32 %v799_v28, %v782_v7 }
 0x5e9   :  { %v801_v9 = vpack.c.bf16 %v800_v8, %v800_v8 }
 0x5eb   :  { %873 = vmatmul.msk.bf16.vlgmr.msra.gmra.mxu2 %vm112_vm1, %v801_v9 }
 0x5ee   :  { %v784_v10 = vpop.f32.mrf.mxu3 }
 0x5f8   :  { %v625_v11 = vpop.f32.mrf.mxu0 }
 0x5f9   :  { %v642_v13 = vadd.f32 %v1204_v61, %v625_v11 }
 0x600   :  { %v627_v12 = vpop.f32.mrf.mxu0 }
 0x617   :  { %v727_v14 = vpop.f32.mrf.mxu0 }
 0x618   :  { %v731_v15 = vadd.f32 %v727_v14, %v642_v13 }
 0x61f   :  { %v729_v16 = vpop.f32.mrf.mxu0 }
 0x66e   :  { %v814_v53 = vpop.f32.mrf.mxu2 }
 0x66f   :  { %v818_v17 = vadd.f32 %v814_v53, %v731_v15 }
 0x671   :  { %v819_v18 = vadd.f32 %v1210_v3, %v818_v17 }
 0x673   :  { %820 = vst.msk [vmem:[#allocation8 + $0x8] sm:$0xff] %vm85_vm0, %v819_v18 }
 0x674   :  { %833 = dma.vmem_to_hbm [thread:$0]  %s826_s17, 256, %s828_s20, [#allocation4], %s1033_s27, %s1033_s27, %s1034_s1  }
 0x676   :  { %v816_v61 = vpop.f32.mrf.mxu2 }
 0x677   :  { %1027 = dma.done.wait [#allocation4], 256  }
 0x678   :  { %1028 = vsyncadd [#allocation4], 4294967040 }
 0x679   :  { %838 = vsyncpa [#allocation3], 1 }
 0x67a   :  { %839 = vsyncpa [#allocation6], 1 }
 0x67b   :  { %840 = vsyncpa [#allocation4], 1 }

</bundles_post_ra>
